<compile_context>
chip_gen: v6e
topology: v6e:2x2x1
jax: 0.10.0
libtpu: 0.0.40
codegen_flags: <defaults>
</compile_context>

<pallas_src>
import jax
import jax.numpy as jnp
from jax import lax
from jax.experimental import pallas as pl
from jax.experimental.pallas import tpu as pltpu


# ------------------------------ Pallas kernel ------------------------------ #

def _shift_lanes(x, lanes, s, L, fill):
    """out[:, l] = x[:, l+s] for 0 <= l+s < L, else `fill` (lane roll + mask)."""
    if s == 0:
        return x
    rolled = pltpu.roll(x, (-s) % L, 1)          # out[l] = x[(l + s) % L]
    valid = jnp.logical_and(lanes + s >= 0, lanes + s < L)
    return jnp.where(valid, rolled, fill)


def _make_backbone_kernel(*, depth, kss, nb_filters, bottleneck_size,
                          use_residual, n_shortcuts):
    kss = tuple(int(k) for k in kss)
    n_br = len(kss)
    F = nb_filters
    B = bottleneck_size
    c_out = (n_br + 1) * F
    nconv = n_br * F
    max_ks = max(kss)
    pad_max = (max_ks - 1) // 2
    has_bottleneck = B > 0
    need_res_scratch = use_residual and depth >= 6   # 2nd+ shortcut needs saved input_res

    def kernel(*refs):
        idx = 0
        x_ref = refs[idx]; idx += 1
        blk = []
        for _ in range(depth):
            blk.append(refs[idx:idx + 3]); idx += 3          # (w_in, w_conv, bias)
        scs = []
        for _ in range(n_shortcuts):
            scs.append(refs[idx:idx + 2]); idx += 2          # (w_sc, sc_bias)
        o_ref = refs[idx]; idx += 1
        act_ref = refs[idx]; idx += 1
        res_ref = refs[idx] if need_res_scratch else None

        L = x_ref.shape[-1]
        res_from_input = True   # trace-time flag: input_res is still the original x

        for d in range(depth):
            w_in_ref, w_conv_ref, bias_ref = blk[d]
            x_cur = x_ref[0] if d == 0 else act_ref[...]     # (Cin_d, L) f32

            # ---- bottleneck 1x1 conv (MXU) + pool-branch 1x1 weight slice ----
            if has_bottleneck:
                bottled = jnp.dot(w_in_ref[0:B, :], x_cur,
                                  preferred_element_type=jnp.float32)   # (B, L)
                w_pool = w_in_ref[B:B + F, :]
            else:
                bottled = x_cur
                w_pool = w_in_ref[...]
            conv_in = bottled.shape[0]

            # ---- im2col: build the lane-shift stack ONCE, one MXU matmul ----
            lanes_b = lax.broadcasted_iota(jnp.int32, (conv_in, L), 1)
            pieces = [_shift_lanes(bottled, lanes_b, t - pad_max, L, 0.0)
                      for t in range(max_ks)]
            stack = jnp.concatenate(pieces, axis=0)           # (max_ks*conv_in, L)
            conv_out = jnp.dot(w_conv_ref[...], stack,
                               preferred_element_type=jnp.float32)      # (nconv, L)

            # ---- MaxPool1d(3,1,pad=1) branch via lane rolls + edge mask ----
            lanes_x = lax.broadcasted_iota(jnp.int32, x_cur.shape, 1)
            left = _shift_lanes(x_cur, lanes_x, -1, L, -jnp.inf)   # x[l-1]
            right = _shift_lanes(x_cur, lanes_x, 1, L, -jnp.inf)   # x[l+1]
            pooled = jnp.maximum(jnp.maximum(x_cur, left), right)
            pool_out = jnp.dot(w_pool, pooled,
                               preferred_element_type=jnp.float32)      # (F, L)

            # ---- folded BN (scale already inside the weights) + ReLU ----
            y0 = jnp.maximum(conv_out + bias_ref[0:nconv, :], 0.0)
            y1 = jnp.maximum(pool_out + bias_ref[nconv:c_out, :], 0.0)

            # ---- fused Shortcut1d: ReLU(y + BN(Conv1x1(input_res))) ----
            is_res = use_residual and (d % 3 == 2)
            if is_res:
                w_sc_ref, sc_bias_ref = scs[d // 3]
                res_val = x_ref[0] if res_from_input else res_ref[...]
                sc = jnp.dot(w_sc_ref[...], res_val,
                             preferred_element_type=jnp.float32) + sc_bias_ref[...]
                y0 = jnp.maximum(y0 + sc[0:nconv, :], 0.0)
                y1 = jnp.maximum(y1 + sc[nconv:c_out, :], 0.0)

            # ---- write branch results directly into sublane slices ----
            if d == depth - 1:
                o_ref[0, 0:nconv, :] = y0
                o_ref[0, nconv:c_out, :] = y1
            else:
                act_ref[0:nconv, :] = y0
                act_ref[nconv:c_out, :] = y1
                if is_res:
                    res_from_input = False
                    if need_res_scratch:
                        res_ref[0:nconv, :] = y0
                        res_ref[nconv:c_out, :] = y1

    return kernel


# ----------------------- host-side weight packing --------------------------- #

def _pack_params(params, kss, nb_filters, bottleneck_size, use_residual):
    """Fold BN scale into conv weights and pack per-block arrays."""
    kss = tuple(int(k) for k in kss)
    n_br = len(kss)
    F = nb_filters
    max_ks = max(kss)
    pad_max = (max_ks - 1) // 2
    depth = len(params['blocks'])

    blocks = []
    for bp in params['blocks']:
        scale = bp['scale'][:, 0]                              # (c_out,)
        bias = bp['bias']                                      # (c_out, 1)
        w_pool = bp['w_pool'] * scale[n_br * F:, None]         # fold BN scale
        if 'w_b' in bp:
            w_in = jnp.concatenate([bp['w_b'], w_pool], axis=0)   # (B+F, Cin)
        else:
            w_in = w_pool                                          # (F, Cin)
        conv_in = bp['w_convs'][0].shape[-1]
        w_conv = jnp.zeros((n_br * F, max_ks * conv_in), jnp.float32)
        for i, (ks, w) in enumerate(zip(kss, bp['w_convs'])):
            ws = w * scale[i * F:(i + 1) * F][None, :, None]   # (ks, F, conv_in)
            pad = (ks - 1) // 2
            for j in range(ks):
                t = j - pad + pad_max                          # tap -> stack slot
                w_conv = w_conv.at[i * F:(i + 1) * F,
                                   t * conv_in:(t + 1) * conv_in].set(ws[j])
        blocks.append((w_in, w_conv, bias))

    shortcuts = []
    for d in range(depth):
        if use_residual and d % 3 == 2:
            sp = params['shortcuts'][d // 3]
            shortcuts.append((sp['w_sc'] * sp['scale'], sp['bias']))
    return blocks, shortcuts


def inception_backbone_forward(x, params, kss, nb_filters, bottleneck_size,
                               use_residual):
    """x: (N, C_in, L) f32 -> (N, (len(kss)+1)*nb_filters, L) f32."""
    assert all(int(k) % 2 == 1 for k in kss), "only odd kernel sizes supported"
    N, C_in, L = x.shape
    depth = len(params['blocks'])
    c_out = (len(kss) + 1) * nb_filters

    block_params, shortcut_params = _pack_params(params, kss, nb_filters,
                                                 bottleneck_size, use_residual)
    kernel = _make_backbone_kernel(
        depth=depth, kss=kss, nb_filters=nb_filters,
        bottleneck_size=bottleneck_size, use_residual=use_residual,
        n_shortcuts=len(shortcut_params))

    inputs = [x]
    in_specs = [pl.BlockSpec((1, C_in, L), lambda n: (n, 0, 0))]

    def add_const(arr):
        inputs.append(arr)
        in_specs.append(pl.BlockSpec(arr.shape, lambda n: (0, 0)))

    for (w_in, w_conv, bias) in block_params:
        add_const(w_in); add_const(w_conv); add_const(bias)
    for (w_sc, sc_bias) in shortcut_params:
        add_const(w_sc); add_const(sc_bias)

    scratch = [pltpu.VMEM((c_out, L), jnp.float32)]            # running activation
    if use_residual and depth >= 6:
        scratch.append(pltpu.VMEM((c_out, L), jnp.float32))    # saved input_res

    return pl.pallas_call(
        kernel,
        out_shape=jax.ShapeDtypeStruct((N, c_out, L), jnp.float32),
        grid_spec=pltpu.PrefetchScalarGridSpec(
            num_scalar_prefetch=0,
            grid=(N,),
            in_specs=in_specs,
            out_specs=pl.BlockSpec((1, c_out, L), lambda n: (n, 0, 0)),
            scratch_shapes=scratch,
        ),
        compiler_params=pltpu.CompilerParams(
            dimension_semantics=("parallel",),
        ),
    )(*inputs)


# --------------------------- deterministic params --------------------------- #

def _fold_bn(key, c, eps=1e-5):
    k1, k2, k3, k4 = jax.random.split(key, 4)
    gamma = 1.0 + 0.1 * jax.random.normal(k1, (c,), jnp.float32)
    beta = 0.1 * jax.random.normal(k2, (c,), jnp.float32)
    mean = 0.1 * jax.random.normal(k3, (c,), jnp.float32)
    var = jax.random.uniform(k4, (c,), jnp.float32, 0.5, 1.5)
    scale = gamma / jnp.sqrt(var + eps)
    bias = beta - mean * scale
    return scale.reshape(c, 1), bias.reshape(c, 1)


def init_params(key, input_channels, kss, depth, bottleneck_size, nb_filters,
                use_residual):
    n_ks = len(kss) + 1
    c_out = n_ks * nb_filters
    blocks, shortcuts = [], {}
    for d in range(depth):
        in_dim = input_channels if d == 0 else c_out
        key, kb, kp, kbn, *kconv = jax.random.split(key, 4 + len(kss))
        bp = {}
        if bottleneck_size > 0:
            bp['w_b'] = 0.2 * jax.random.normal(
                kb, (bottleneck_size, in_dim), jnp.float32)
            conv_in = bottleneck_size
        else:
            conv_in = in_dim
        bp['w_convs'] = [0.2 * jax.random.normal(kk, (ks, nb_filters, conv_in),
                                                 jnp.float32)
                         for kk, ks in zip(kconv, kss)]
        bp['w_pool'] = 0.2 * jax.random.normal(kp, (nb_filters, in_dim),
                                               jnp.float32)
        bp['scale'], bp['bias'] = _fold_bn(kbn, c_out)
        blocks.append(bp)

        if use_residual and d % 3 == 2:
            s = d // 3
            res_in = input_channels if s == 0 else c_out
            key, ksc, kbn2 = jax.random.split(key, 3)
            sp = {'w_sc': 0.2 * jax.random.normal(ksc, (c_out, res_in),
                                                  jnp.float32)}
            sp['scale'], sp['bias'] = _fold_bn(kbn2, c_out)
            shortcuts[s] = sp
    return {'blocks': blocks, 'shortcuts': shortcuts}


# ------------------------------ pure-JAX reference -------------------------- #

def _conv1x1_ref(x, w):
    return jnp.einsum('oc,ncl->nol', w, x, precision=lax.Precision.HIGHEST)


def _conv1d_same_ref(x, w):
    ks = w.shape[0]
    pad = (ks - 1) // 2
    wt = jnp.transpose(w, (1, 2, 0))                           # (O, I, ks)
    return lax.conv_general_dilated(
        x, wt, window_strides=(1,), padding=[(pad, pad)],
        dimension_numbers=('NCH', 'OIH', 'NCH'),
        precision=lax.Precision.HIGHEST)


def _maxpool3_ref(x):
    return lax.reduce_window(x, -jnp.inf, lax.max,
                             window_dimensions=(1, 1, 3),
                             window_strides=(1, 1, 1),
                             padding=((0, 0), (0, 0), (1, 1)))


def _reference(x, params, kss, nb_filters, use_residual):
    depth = len(params['blocks'])
    input_res = x
    for d in range(depth):
        bp = params['blocks'][d]
        bottled = _conv1x1_ref(x, bp['w_b']) if 'w_b' in bp else x
        branches = [_conv1d_same_ref(bottled, w) for w in bp['w_convs']]
        branches.append(_conv1x1_ref(_maxpool3_ref(x), bp['w_pool']))
        y = jnp.concatenate(branches, axis=1)
        y = y * bp['scale'][None] + bp['bias'][None]
        y = jnp.maximum(y, 0.0)
        if use_residual and d % 3 == 2:
            sp = params['shortcuts'][d // 3]
            sc = _conv1x1_ref(input_res, sp['w_sc'])
            sc = sc * sp['scale'][None] + sp['bias'][None]
            y = jnp.maximum(y + sc, 0.0)
            input_res = y
        x = y
    return x


# ----------------------------------- main ----------------------------------- #

if __name__ == "__main__":
    key = jax.random.PRNGKey(0)

    N, C_in, L = 2, 4, 128          # batch, input_channels, sequence length
    kss = (5, 3)                    # inception kernel sizes (odd)
    depth = 3                       # -> one residual shortcut at d == 2
    bottleneck_size = 8
    nb_filters = 8
    use_residual = True
    c_out = (len(kss) + 1) * nb_filters

    key, kx, kp = jax.random.split(key, 3)
    x = jax.random.normal(kx, (N, C_in, L), dtype=jnp.float32)
    params = init_params(kp, C_in, kss, depth, bottleneck_size, nb_filters,
                         use_residual)

    out = inception_backbone_forward(x, params, kss, nb_filters,
                                     bottleneck_size, use_residual)
    out = jax.block_until_ready(out)

    ref = _reference(x, params, kss, nb_filters, use_residual)
    assert out.shape == (N, c_out, L), out.shape
    max_err = float(jnp.max(jnp.abs(out - ref)))
    assert jnp.allclose(out, ref, atol=1e-2, rtol=1e-2), max_err

    print("KERNEL_OK")
</pallas_src>

<mosaic_0001>
module attributes {stable_mosaic.version = 11 : i64} {
  func.func @kernel(%arg0: i32, %arg1: memref<1x4x128xf32, #tpu.memory_space<vmem>>, %arg2: memref<16x4xf32, #tpu.memory_space<vmem>>, %arg3: memref<16x40xf32, #tpu.memory_space<vmem>>, %arg4: memref<24x1xf32, #tpu.memory_space<vmem>>, %arg5: memref<16x24xf32, #tpu.memory_space<vmem>>, %arg6: memref<16x40xf32, #tpu.memory_space<vmem>>, %arg7: memref<24x1xf32, #tpu.memory_space<vmem>>, %arg8: memref<16x24xf32, #tpu.memory_space<vmem>>, %arg9: memref<16x40xf32, #tpu.memory_space<vmem>>, %arg10: memref<24x1xf32, #tpu.memory_space<vmem>>, %arg11: memref<24x4xf32, #tpu.memory_space<vmem>>, %arg12: memref<24x1xf32, #tpu.memory_space<vmem>>, %arg13: memref<1x24x128xf32, #tpu.memory_space<vmem>>, %arg14: memref<24x128xf32, #tpu.memory_space<vmem>>) attributes {dimension_semantics = [#tpu.dimension_semantics<parallel>], iteration_bounds = array<i64: 2>, scalar_prefetch = 0 : i64, scratch_operands = 1 : i64, tpu.core_type = #tpu.core_type<tc>, window_params = [{transform_indices = @transform_0, window_bounds = array<i64: 1, 4, 128>}, {pipeline_mode = #tpu.pipeline_mode<synchronous>, transform_indices = @transform_1, window_bounds = array<i64: 16, 4>}, {pipeline_mode = #tpu.pipeline_mode<synchronous>, transform_indices = @transform_2, window_bounds = array<i64: 16, 40>}, {pipeline_mode = #tpu.pipeline_mode<synchronous>, transform_indices = @transform_3, window_bounds = array<i64: 24, 1>}, {pipeline_mode = #tpu.pipeline_mode<synchronous>, transform_indices = @transform_4, window_bounds = array<i64: 16, 24>}, {pipeline_mode = #tpu.pipeline_mode<synchronous>, transform_indices = @transform_5, window_bounds = array<i64: 16, 40>}, {pipeline_mode = #tpu.pipeline_mode<synchronous>, transform_indices = @transform_6, window_bounds = array<i64: 24, 1>}, {pipeline_mode = #tpu.pipeline_mode<synchronous>, transform_indices = @transform_7, window_bounds = array<i64: 16, 24>}, {pipeline_mode = #tpu.pipeline_mode<synchronous>, transform_indices = @transform_8, window_bounds = array<i64: 16, 40>}, {pipeline_mode = #tpu.pipeline_mode<synchronous>, transform_indices = @transform_9, window_bounds = array<i64: 24, 1>}, {pipeline_mode = #tpu.pipeline_mode<synchronous>, transform_indices = @transform_10, window_bounds = array<i64: 24, 4>}, {pipeline_mode = #tpu.pipeline_mode<synchronous>, transform_indices = @transform_11, window_bounds = array<i64: 24, 1>}, {transform_indices = @transform_12, window_bounds = array<i64: 1, 24, 128>}]} {
    %c0 = arith.constant 0 : index
    %c0_0 = arith.constant 0 : index
    %c0_1 = arith.constant 0 : index
    %0 = vector.load %arg1[%c0, %c0_0, %c0_1] : memref<1x4x128xf32, #tpu.memory_space<vmem>>, vector<1x4x128xf32>
    %1 = vector.shape_cast %0 : vector<1x4x128xf32> to vector<4x128xf32>
    %c0_2 = arith.constant 0 : index
    %c0_3 = arith.constant 0 : index
    %2 = vector.load %arg2[%c0_2, %c0_3] : memref<16x4xf32, #tpu.memory_space<vmem>>, vector<8x4xf32>
    %cst = arith.constant dense<0.000000e+00> : vector<8x128xf32>
    %3 = tpu.matmul %2, %1, %cst {dimension_numbers = #tpu.dot_dimension_numbers<[1], [0], [0], [1], [0, 0, 1, 1], [], []>} : vector<8x4xf32>, vector<4x128xf32>, vector<8x128xf32> -> vector<8x128xf32>
    %c8 = arith.constant 8 : index
    %c0_4 = arith.constant 0 : index
    %4 = vector.load %arg2[%c8, %c0_4] : memref<16x4xf32, #tpu.memory_space<vmem>>, vector<8x4xf32>
    %5 = tpu.iota {dimensions = array<i32: 1>} : vector<8x128xi32>
    %c2_i32 = arith.constant 2 : i32
    %6 = tpu.dynamic_rotate %3 by %c2_i32 dim 1 : vector<8x128xf32>, i32 -> vector<8x128xf32>
    %c-2_i32 = arith.constant -2 : i32
    %7 = vector.broadcast %c-2_i32 : i32 to vector<8x128xi32>
    %8 = arith.addi %5, %7 : vector<8x128xi32>
    %c0_i32 = arith.constant 0 : i32
    %9 = vector.broadcast %c0_i32 : i32 to vector<8x128xi32>
    %10 = arith.cmpi sge, %8, %9 : vector<8x128xi32>
    %c-2_i32_5 = arith.constant -2 : i32
    %11 = vector.broadcast %c-2_i32_5 : i32 to vector<8x128xi32>
    %12 = arith.addi %5, %11 : vector<8x128xi32>
    %c128_i32 = arith.constant 128 : i32
    %13 = vector.broadcast %c128_i32 : i32 to vector<8x128xi32>
    %14 = arith.cmpi slt, %12, %13 : vector<8x128xi32>
    %15 = arith.andi %10, %14 : vector<8x128xi1>
    %cst_6 = arith.constant 0.000000e+00 : f32
    %16 = vector.broadcast %cst_6 : f32 to vector<8x128xf32>
    %17 = arith.select %15, %6, %16 : vector<8x128xi1>, vector<8x128xf32>
    %c1_i32 = arith.constant 1 : i32
    %18 = tpu.dynamic_rotate %3 by %c1_i32 dim 1 : vector<8x128xf32>, i32 -> vector<8x128xf32>
    %c-1_i32 = arith.constant -1 : i32
    %19 = vector.broadcast %c-1_i32 : i32 to vector<8x128xi32>
    %20 = arith.addi %5, %19 : vector<8x128xi32>
    %c0_i32_7 = arith.constant 0 : i32
    %21 = vector.broadcast %c0_i32_7 : i32 to vector<8x128xi32>
    %22 = arith.cmpi sge, %20, %21 : vector<8x128xi32>
    %c-1_i32_8 = arith.constant -1 : i32
    %23 = vector.broadcast %c-1_i32_8 : i32 to vector<8x128xi32>
    %24 = arith.addi %5, %23 : vector<8x128xi32>
    %c128_i32_9 = arith.constant 128 : i32
    %25 = vector.broadcast %c128_i32_9 : i32 to vector<8x128xi32>
    %26 = arith.cmpi slt, %24, %25 : vector<8x128xi32>
    %27 = arith.andi %22, %26 : vector<8x128xi1>
    %cst_10 = arith.constant 0.000000e+00 : f32
    %28 = vector.broadcast %cst_10 : f32 to vector<8x128xf32>
    %29 = arith.select %27, %18, %28 : vector<8x128xi1>, vector<8x128xf32>
    %c127_i32 = arith.constant 127 : i32
    %30 = tpu.dynamic_rotate %3 by %c127_i32 dim 1 : vector<8x128xf32>, i32 -> vector<8x128xf32>
    %c1_i32_11 = arith.constant 1 : i32
    %31 = vector.broadcast %c1_i32_11 : i32 to vector<8x128xi32>
    %32 = arith.addi %5, %31 : vector<8x128xi32>
    %c0_i32_12 = arith.constant 0 : i32
    %33 = vector.broadcast %c0_i32_12 : i32 to vector<8x128xi32>
    %34 = arith.cmpi sge, %32, %33 : vector<8x128xi32>
    %c1_i32_13 = arith.constant 1 : i32
    %35 = vector.broadcast %c1_i32_13 : i32 to vector<8x128xi32>
    %36 = arith.addi %5, %35 : vector<8x128xi32>
    %c128_i32_14 = arith.constant 128 : i32
    %37 = vector.broadcast %c128_i32_14 : i32 to vector<8x128xi32>
    %38 = arith.cmpi slt, %36, %37 : vector<8x128xi32>
    %39 = arith.andi %34, %38 : vector<8x128xi1>
    %cst_15 = arith.constant 0.000000e+00 : f32
    %40 = vector.broadcast %cst_15 : f32 to vector<8x128xf32>
    %41 = arith.select %39, %30, %40 : vector<8x128xi1>, vector<8x128xf32>
    %c126_i32 = arith.constant 126 : i32
    %42 = tpu.dynamic_rotate %3 by %c126_i32 dim 1 : vector<8x128xf32>, i32 -> vector<8x128xf32>
    %c2_i32_16 = arith.constant 2 : i32
    %43 = vector.broadcast %c2_i32_16 : i32 to vector<8x128xi32>
    %44 = arith.addi %5, %43 : vector<8x128xi32>
    %c0_i32_17 = arith.constant 0 : i32
    %45 = vector.broadcast %c0_i32_17 : i32 to vector<8x128xi32>
    %46 = arith.cmpi sge, %44, %45 : vector<8x128xi32>
    %c2_i32_18 = arith.constant 2 : i32
    %47 = vector.broadcast %c2_i32_18 : i32 to vector<8x128xi32>
    %48 = arith.addi %5, %47 : vector<8x128xi32>
    %c128_i32_19 = arith.constant 128 : i32
    %49 = vector.broadcast %c128_i32_19 : i32 to vector<8x128xi32>
    %50 = arith.cmpi slt, %48, %49 : vector<8x128xi32>
    %51 = arith.andi %46, %50 : vector<8x128xi1>
    %cst_20 = arith.constant 0.000000e+00 : f32
    %52 = vector.broadcast %cst_20 : f32 to vector<8x128xf32>
    %53 = arith.select %51, %42, %52 : vector<8x128xi1>, vector<8x128xf32>
    %54 = tpu.concatenate %17, %29, %3, %41, %53 in 0 : vector<8x128xf32>, vector<8x128xf32>, vector<8x128xf32>, vector<8x128xf32>, vector<8x128xf32> -> vector<40x128xf32>
    %c0_21 = arith.constant 0 : index
    %c0_22 = arith.constant 0 : index
    %55 = vector.load %arg3[%c0_21, %c0_22] : memref<16x40xf32, #tpu.memory_space<vmem>>, vector<16x40xf32>
    %cst_23 = arith.constant dense<0.000000e+00> : vector<16x128xf32>
    %56 = tpu.matmul %55, %54, %cst_23 {dimension_numbers = #tpu.dot_dimension_numbers<[1], [0], [0], [1], [0, 0, 1, 1], [], []>} : vector<16x40xf32>, vector<40x128xf32>, vector<16x128xf32> -> vector<16x128xf32>
    %57 = tpu.iota {dimensions = array<i32: 1>} : vector<4x128xi32>
    %c1_i32_24 = arith.constant 1 : i32
    %58 = tpu.dynamic_rotate %1 by %c1_i32_24 dim 1 : vector<4x128xf32>, i32 -> vector<4x128xf32>
    %c-1_i32_25 = arith.constant -1 : i32
    %59 = vector.broadcast %c-1_i32_25 : i32 to vector<4x128xi32>
    %60 = arith.addi %57, %59 : vector<4x128xi32>
    %c0_i32_26 = arith.constant 0 : i32
    %61 = vector.broadcast %c0_i32_26 : i32 to vector<4x128xi32>
    %62 = arith.cmpi sge, %60, %61 : vector<4x128xi32>
    %c-1_i32_27 = arith.constant -1 : i32
    %63 = vector.broadcast %c-1_i32_27 : i32 to vector<4x128xi32>
    %64 = arith.addi %57, %63 : vector<4x128xi32>
    %c128_i32_28 = arith.constant 128 : i32
    %65 = vector.broadcast %c128_i32_28 : i32 to vector<4x128xi32>
    %66 = arith.cmpi slt, %64, %65 : vector<4x128xi32>
    %67 = arith.andi %62, %66 : vector<4x128xi1>
    %cst_29 = arith.constant 0xFF800000 : f32
    %68 = vector.broadcast %cst_29 : f32 to vector<4x128xf32>
    %69 = arith.select %67, %58, %68 : vector<4x128xi1>, vector<4x128xf32>
    %c127_i32_30 = arith.constant 127 : i32
    %70 = tpu.dynamic_rotate %1 by %c127_i32_30 dim 1 : vector<4x128xf32>, i32 -> vector<4x128xf32>
    %c1_i32_31 = arith.constant 1 : i32
    %71 = vector.broadcast %c1_i32_31 : i32 to vector<4x128xi32>
    %72 = arith.addi %57, %71 : vector<4x128xi32>
    %c0_i32_32 = arith.constant 0 : i32
    %73 = vector.broadcast %c0_i32_32 : i32 to vector<4x128xi32>
    %74 = arith.cmpi sge, %72, %73 : vector<4x128xi32>
    %c1_i32_33 = arith.constant 1 : i32
    %75 = vector.broadcast %c1_i32_33 : i32 to vector<4x128xi32>
    %76 = arith.addi %57, %75 : vector<4x128xi32>
    %c128_i32_34 = arith.constant 128 : i32
    %77 = vector.broadcast %c128_i32_34 : i32 to vector<4x128xi32>
    %78 = arith.cmpi slt, %76, %77 : vector<4x128xi32>
    %79 = arith.andi %74, %78 : vector<4x128xi1>
    %cst_35 = arith.constant 0xFF800000 : f32
    %80 = vector.broadcast %cst_35 : f32 to vector<4x128xf32>
    %81 = arith.select %79, %70, %80 : vector<4x128xi1>, vector<4x128xf32>
    %82 = arith.maximumf %1, %69 : vector<4x128xf32>
    %83 = arith.maximumf %82, %81 : vector<4x128xf32>
    %cst_36 = arith.constant dense<0.000000e+00> : vector<8x128xf32>
    %84 = tpu.matmul %4, %83, %cst_36 {dimension_numbers = #tpu.dot_dimension_numbers<[1], [0], [0], [1], [0, 0, 1, 1], [], []>} : vector<8x4xf32>, vector<4x128xf32>, vector<8x128xf32> -> vector<8x128xf32>
    %c0_37 = arith.constant 0 : index
    %c0_38 = arith.constant 0 : index
    %85 = vector.load %arg4[%c0_37, %c0_38] : memref<24x1xf32, #tpu.memory_space<vmem>>, vector<16x1xf32>
    %86 = vector.broadcast %85 : vector<16x1xf32> to vector<16x128xf32>
    %87 = arith.addf %56, %86 : vector<16x128xf32>
    %cst_39 = arith.constant 0.000000e+00 : f32
    %88 = vector.broadcast %cst_39 : f32 to vector<16x128xf32>
    %89 = arith.maximumf %87, %88 : vector<16x128xf32>
    %c16 = arith.constant 16 : index
    %c0_40 = arith.constant 0 : index
    %90 = vector.load %arg4[%c16, %c0_40] : memref<24x1xf32, #tpu.memory_space<vmem>>, vector<8x1xf32>
    %91 = vector.broadcast %90 : vector<8x1xf32> to vector<8x128xf32>
    %92 = arith.addf %84, %91 : vector<8x128xf32>
    %cst_41 = arith.constant 0.000000e+00 : f32
    %93 = vector.broadcast %cst_41 : f32 to vector<8x128xf32>
    %94 = arith.maximumf %92, %93 : vector<8x128xf32>
    %c0_42 = arith.constant 0 : index
    %c0_43 = arith.constant 0 : index
    %95 = vector.load %arg14[%c0_42, %c0_43] : memref<24x128xf32, #tpu.memory_space<vmem>>, vector<16x128xf32>
    tpu.vector_store %arg14[%c0_42, %c0_43], %89 {strides = array<i32>} : memref<24x128xf32, #tpu.memory_space<vmem>>, vector<16x128xf32>,
    %c16_44 = arith.constant 16 : index
    %c0_45 = arith.constant 0 : index
    %96 = vector.load %arg14[%c16_44, %c0_45] : memref<24x128xf32, #tpu.memory_space<vmem>>, vector<8x128xf32>
    tpu.vector_store %arg14[%c16_44, %c0_45], %94 {strides = array<i32>} : memref<24x128xf32, #tpu.memory_space<vmem>>, vector<8x128xf32>,
    %c0_46 = arith.constant 0 : index
    %c0_47 = arith.constant 0 : index
    %97 = vector.load %arg14[%c0_46, %c0_47] : memref<24x128xf32, #tpu.memory_space<vmem>>, vector<24x128xf32>
    %c0_48 = arith.constant 0 : index
    %c0_49 = arith.constant 0 : index
    %98 = vector.load %arg5[%c0_48, %c0_49] : memref<16x24xf32, #tpu.memory_space<vmem>>, vector<8x24xf32>
    %cst_50 = arith.constant dense<0.000000e+00> : vector<8x128xf32>
    %99 = tpu.matmul %98, %97, %cst_50 {dimension_numbers = #tpu.dot_dimension_numbers<[1], [0], [0], [1], [0, 0, 1, 1], [], []>} : vector<8x24xf32>, vector<24x128xf32>, vector<8x128xf32> -> vector<8x128xf32>
    %c8_51 = arith.constant 8 : index
    %c0_52 = arith.constant 0 : index
    %100 = vector.load %arg5[%c8_51, %c0_52] : memref<16x24xf32, #tpu.memory_space<vmem>>, vector<8x24xf32>
    %101 = tpu.iota {dimensions = array<i32: 1>} : vector<8x128xi32>
    %c2_i32_53 = arith.constant 2 : i32
    %102 = tpu.dynamic_rotate %99 by %c2_i32_53 dim 1 : vector<8x128xf32>, i32 -> vector<8x128xf32>
    %c-2_i32_54 = arith.constant -2 : i32
    %103 = vector.broadcast %c-2_i32_54 : i32 to vector<8x128xi32>
    %104 = arith.addi %101, %103 : vector<8x128xi32>
    %c0_i32_55 = arith.constant 0 : i32
    %105 = vector.broadcast %c0_i32_55 : i32 to vector<8x128xi32>
    %106 = arith.cmpi sge, %104, %105 : vector<8x128xi32>
    %c-2_i32_56 = arith.constant -2 : i32
    %107 = vector.broadcast %c-2_i32_56 : i32 to vector<8x128xi32>
    %108 = arith.addi %101, %107 : vector<8x128xi32>
    %c128_i32_57 = arith.constant 128 : i32
    %109 = vector.broadcast %c128_i32_57 : i32 to vector<8x128xi32>
    %110 = arith.cmpi slt, %108, %109 : vector<8x128xi32>
    %111 = arith.andi %106, %110 : vector<8x128xi1>
    %cst_58 = arith.constant 0.000000e+00 : f32
    %112 = vector.broadcast %cst_58 : f32 to vector<8x128xf32>
    %113 = arith.select %111, %102, %112 : vector<8x128xi1>, vector<8x128xf32>
    %c1_i32_59 = arith.constant 1 : i32
    %114 = tpu.dynamic_rotate %99 by %c1_i32_59 dim 1 : vector<8x128xf32>, i32 -> vector<8x128xf32>
    %c-1_i32_60 = arith.constant -1 : i32
    %115 = vector.broadcast %c-1_i32_60 : i32 to vector<8x128xi32>
    %116 = arith.addi %101, %115 : vector<8x128xi32>
    %c0_i32_61 = arith.constant 0 : i32
    %117 = vector.broadcast %c0_i32_61 : i32 to vector<8x128xi32>
    %118 = arith.cmpi sge, %116, %117 : vector<8x128xi32>
    %c-1_i32_62 = arith.constant -1 : i32
    %119 = vector.broadcast %c-1_i32_62 : i32 to vector<8x128xi32>
    %120 = arith.addi %101, %119 : vector<8x128xi32>
    %c128_i32_63 = arith.constant 128 : i32
    %121 = vector.broadcast %c128_i32_63 : i32 to vector<8x128xi32>
    %122 = arith.cmpi slt, %120, %121 : vector<8x128xi32>
    %123 = arith.andi %118, %122 : vector<8x128xi1>
    %cst_64 = arith.constant 0.000000e+00 : f32
    %124 = vector.broadcast %cst_64 : f32 to vector<8x128xf32>
    %125 = arith.select %123, %114, %124 : vector<8x128xi1>, vector<8x128xf32>
    %c127_i32_65 = arith.constant 127 : i32
    %126 = tpu.dynamic_rotate %99 by %c127_i32_65 dim 1 : vector<8x128xf32>, i32 -> vector<8x128xf32>
    %c1_i32_66 = arith.constant 1 : i32
    %127 = vector.broadcast %c1_i32_66 : i32 to vector<8x128xi32>
    %128 = arith.addi %101, %127 : vector<8x128xi32>
    %c0_i32_67 = arith.constant 0 : i32
    %129 = vector.broadcast %c0_i32_67 : i32 to vector<8x128xi32>
    %130 = arith.cmpi sge, %128, %129 : vector<8x128xi32>
    %c1_i32_68 = arith.constant 1 : i32
    %131 = vector.broadcast %c1_i32_68 : i32 to vector<8x128xi32>
    %132 = arith.addi %101, %131 : vector<8x128xi32>
    %c128_i32_69 = arith.constant 128 : i32
    %133 = vector.broadcast %c128_i32_69 : i32 to vector<8x128xi32>
    %134 = arith.cmpi slt, %132, %133 : vector<8x128xi32>
    %135 = arith.andi %130, %134 : vector<8x128xi1>
    %cst_70 = arith.constant 0.000000e+00 : f32
    %136 = vector.broadcast %cst_70 : f32 to vector<8x128xf32>
    %137 = arith.select %135, %126, %136 : vector<8x128xi1>, vector<8x128xf32>
    %c126_i32_71 = arith.constant 126 : i32
    %138 = tpu.dynamic_rotate %99 by %c126_i32_71 dim 1 : vector<8x128xf32>, i32 -> vector<8x128xf32>
    %c2_i32_72 = arith.constant 2 : i32
    %139 = vector.broadcast %c2_i32_72 : i32 to vector<8x128xi32>
    %140 = arith.addi %101, %139 : vector<8x128xi32>
    %c0_i32_73 = arith.constant 0 : i32
    %141 = vector.broadcast %c0_i32_73 : i32 to vector<8x128xi32>
    %142 = arith.cmpi sge, %140, %141 : vector<8x128xi32>
    %c2_i32_74 = arith.constant 2 : i32
    %143 = vector.broadcast %c2_i32_74 : i32 to vector<8x128xi32>
    %144 = arith.addi %101, %143 : vector<8x128xi32>
    %c128_i32_75 = arith.constant 128 : i32
    %145 = vector.broadcast %c128_i32_75 : i32 to vector<8x128xi32>
    %146 = arith.cmpi slt, %144, %145 : vector<8x128xi32>
    %147 = arith.andi %142, %146 : vector<8x128xi1>
    %cst_76 = arith.constant 0.000000e+00 : f32
    %148 = vector.broadcast %cst_76 : f32 to vector<8x128xf32>
    %149 = arith.select %147, %138, %148 : vector<8x128xi1>, vector<8x128xf32>
    %150 = tpu.concatenate %113, %125, %99, %137, %149 in 0 : vector<8x128xf32>, vector<8x128xf32>, vector<8x128xf32>, vector<8x128xf32>, vector<8x128xf32> -> vector<40x128xf32>
    %c0_77 = arith.constant 0 : index
    %c0_78 = arith.constant 0 : index
    %151 = vector.load %arg6[%c0_77, %c0_78] : memref<16x40xf32, #tpu.memory_space<vmem>>, vector<16x40xf32>
    %cst_79 = arith.constant dense<0.000000e+00> : vector<16x128xf32>
    %152 = tpu.matmul %151, %150, %cst_79 {dimension_numbers = #tpu.dot_dimension_numbers<[1], [0], [0], [1], [0, 0, 1, 1], [], []>} : vector<16x40xf32>, vector<40x128xf32>, vector<16x128xf32> -> vector<16x128xf32>
    %153 = tpu.iota {dimensions = array<i32: 1>} : vector<24x128xi32>
    %c1_i32_80 = arith.constant 1 : i32
    %154 = tpu.dynamic_rotate %97 by %c1_i32_80 dim 1 : vector<24x128xf32>, i32 -> vector<24x128xf32>
    %c-1_i32_81 = arith.constant -1 : i32
    %155 = vector.broadcast %c-1_i32_81 : i32 to vector<24x128xi32>
    %156 = arith.addi %153, %155 : vector<24x128xi32>
    %c0_i32_82 = arith.constant 0 : i32
    %157 = vector.broadcast %c0_i32_82 : i32 to vector<24x128xi32>
    %158 = arith.cmpi sge, %156, %157 : vector<24x128xi32>
    %c-1_i32_83 = arith.constant -1 : i32
    %159 = vector.broadcast %c-1_i32_83 : i32 to vector<24x128xi32>
    %160 = arith.addi %153, %159 : vector<24x128xi32>
    %c128_i32_84 = arith.constant 128 : i32
    %161 = vector.broadcast %c128_i32_84 : i32 to vector<24x128xi32>
    %162 = arith.cmpi slt, %160, %161 : vector<24x128xi32>
    %163 = arith.andi %158, %162 : vector<24x128xi1>
    %cst_85 = arith.constant 0xFF800000 : f32
    %164 = vector.broadcast %cst_85 : f32 to vector<24x128xf32>
    %165 = arith.select %163, %154, %164 : vector<24x128xi1>, vector<24x128xf32>
    %c127_i32_86 = arith.constant 127 : i32
    %166 = tpu.dynamic_rotate %97 by %c127_i32_86 dim 1 : vector<24x128xf32>, i32 -> vector<24x128xf32>
    %c1_i32_87 = arith.constant 1 : i32
    %167 = vector.broadcast %c1_i32_87 : i32 to vector<24x128xi32>
    %168 = arith.addi %153, %167 : vector<24x128xi32>
    %c0_i32_88 = arith.constant 0 : i32
    %169 = vector.broadcast %c0_i32_88 : i32 to vector<24x128xi32>
    %170 = arith.cmpi sge, %168, %169 : vector<24x128xi32>
    %c1_i32_89 = arith.constant 1 : i32
    %171 = vector.broadcast %c1_i32_89 : i32 to vector<24x128xi32>
    %172 = arith.addi %153, %171 : vector<24x128xi32>
    %c128_i32_90 = arith.constant 128 : i32
    %173 = vector.broadcast %c128_i32_90 : i32 to vector<24x128xi32>
    %174 = arith.cmpi slt, %172, %173 : vector<24x128xi32>
    %175 = arith.andi %170, %174 : vector<24x128xi1>
    %cst_91 = arith.constant 0xFF800000 : f32
    %176 = vector.broadcast %cst_91 : f32 to vector<24x128xf32>
    %177 = arith.select %175, %166, %176 : vector<24x128xi1>, vector<24x128xf32>
    %178 = arith.maximumf %97, %165 : vector<24x128xf32>
    %179 = arith.maximumf %178, %177 : vector<24x128xf32>
    %cst_92 = arith.constant dense<0.000000e+00> : vector<8x128xf32>
    %180 = tpu.matmul %100, %179, %cst_92 {dimension_numbers = #tpu.dot_dimension_numbers<[1], [0], [0], [1], [0, 0, 1, 1], [], []>} : vector<8x24xf32>, vector<24x128xf32>, vector<8x128xf32> -> vector<8x128xf32>
    %c0_93 = arith.constant 0 : index
    %c0_94 = arith.constant 0 : index
    %181 = vector.load %arg7[%c0_93, %c0_94] : memref<24x1xf32, #tpu.memory_space<vmem>>, vector<16x1xf32>
    %182 = vector.broadcast %181 : vector<16x1xf32> to vector<16x128xf32>
    %183 = arith.addf %152, %182 : vector<16x128xf32>
    %cst_95 = arith.constant 0.000000e+00 : f32
    %184 = vector.broadcast %cst_95 : f32 to vector<16x128xf32>
    %185 = arith.maximumf %183, %184 : vector<16x128xf32>
    %c16_96 = arith.constant 16 : index
    %c0_97 = arith.constant 0 : index
    %186 = vector.load %arg7[%c16_96, %c0_97] : memref<24x1xf32, #tpu.memory_space<vmem>>, vector<8x1xf32>
    %187 = vector.broadcast %186 : vector<8x1xf32> to vector<8x128xf32>
    %188 = arith.addf %180, %187 : vector<8x128xf32>
    %cst_98 = arith.constant 0.000000e+00 : f32
    %189 = vector.broadcast %cst_98 : f32 to vector<8x128xf32>
    %190 = arith.maximumf %188, %189 : vector<8x128xf32>
    %c0_99 = arith.constant 0 : index
    %c0_100 = arith.constant 0 : index
    %191 = vector.load %arg14[%c0_99, %c0_100] : memref<24x128xf32, #tpu.memory_space<vmem>>, vector<16x128xf32>
    tpu.vector_store %arg14[%c0_99, %c0_100], %185 {strides = array<i32>} : memref<24x128xf32, #tpu.memory_space<vmem>>, vector<16x128xf32>,
    %c16_101 = arith.constant 16 : index
    %c0_102 = arith.constant 0 : index
    %192 = vector.load %arg14[%c16_101, %c0_102] : memref<24x128xf32, #tpu.memory_space<vmem>>, vector<8x128xf32>
    tpu.vector_store %arg14[%c16_101, %c0_102], %190 {strides = array<i32>} : memref<24x128xf32, #tpu.memory_space<vmem>>, vector<8x128xf32>,
    %c0_103 = arith.constant 0 : index
    %c0_104 = arith.constant 0 : index
    %193 = vector.load %arg14[%c0_103, %c0_104] : memref<24x128xf32, #tpu.memory_space<vmem>>, vector<24x128xf32>
    %c0_105 = arith.constant 0 : index
    %c0_106 = arith.constant 0 : index
    %194 = vector.load %arg8[%c0_105, %c0_106] : memref<16x24xf32, #tpu.memory_space<vmem>>, vector<8x24xf32>
    %cst_107 = arith.constant dense<0.000000e+00> : vector<8x128xf32>
    %195 = tpu.matmul %194, %193, %cst_107 {dimension_numbers = #tpu.dot_dimension_numbers<[1], [0], [0], [1], [0, 0, 1, 1], [], []>} : vector<8x24xf32>, vector<24x128xf32>, vector<8x128xf32> -> vector<8x128xf32>
    %c8_108 = arith.constant 8 : index
    %c0_109 = arith.constant 0 : index
    %196 = vector.load %arg8[%c8_108, %c0_109] : memref<16x24xf32, #tpu.memory_space<vmem>>, vector<8x24xf32>
    %197 = tpu.iota {dimensions = array<i32: 1>} : vector<8x128xi32>
    %c2_i32_110 = arith.constant 2 : i32
    %198 = tpu.dynamic_rotate %195 by %c2_i32_110 dim 1 : vector<8x128xf32>, i32 -> vector<8x128xf32>
    %c-2_i32_111 = arith.constant -2 : i32
    %199 = vector.broadcast %c-2_i32_111 : i32 to vector<8x128xi32>
    %200 = arith.addi %197, %199 : vector<8x128xi32>
    %c0_i32_112 = arith.constant 0 : i32
    %201 = vector.broadcast %c0_i32_112 : i32 to vector<8x128xi32>
    %202 = arith.cmpi sge, %200, %201 : vector<8x128xi32>
    %c-2_i32_113 = arith.constant -2 : i32
    %203 = vector.broadcast %c-2_i32_113 : i32 to vector<8x128xi32>
    %204 = arith.addi %197, %203 : vector<8x128xi32>
    %c128_i32_114 = arith.constant 128 : i32
    %205 = vector.broadcast %c128_i32_114 : i32 to vector<8x128xi32>
    %206 = arith.cmpi slt, %204, %205 : vector<8x128xi32>
    %207 = arith.andi %202, %206 : vector<8x128xi1>
    %cst_115 = arith.constant 0.000000e+00 : f32
    %208 = vector.broadcast %cst_115 : f32 to vector<8x128xf32>
    %209 = arith.select %207, %198, %208 : vector<8x128xi1>, vector<8x128xf32>
    %c1_i32_116 = arith.constant 1 : i32
    %210 = tpu.dynamic_rotate %195 by %c1_i32_116 dim 1 : vector<8x128xf32>, i32 -> vector<8x128xf32>
    %c-1_i32_117 = arith.constant -1 : i32
    %211 = vector.broadcast %c-1_i32_117 : i32 to vector<8x128xi32>
    %212 = arith.addi %197, %211 : vector<8x128xi32>
    %c0_i32_118 = arith.constant 0 : i32
    %213 = vector.broadcast %c0_i32_118 : i32 to vector<8x128xi32>
    %214 = arith.cmpi sge, %212, %213 : vector<8x128xi32>
    %c-1_i32_119 = arith.constant -1 : i32
    %215 = vector.broadcast %c-1_i32_119 : i32 to vector<8x128xi32>
    %216 = arith.addi %197, %215 : vector<8x128xi32>
    %c128_i32_120 = arith.constant 128 : i32
    %217 = vector.broadcast %c128_i32_120 : i32 to vector<8x128xi32>
    %218 = arith.cmpi slt, %216, %217 : vector<8x128xi32>
    %219 = arith.andi %214, %218 : vector<8x128xi1>
    %cst_121 = arith.constant 0.000000e+00 : f32
    %220 = vector.broadcast %cst_121 : f32 to vector<8x128xf32>
    %221 = arith.select %219, %210, %220 : vector<8x128xi1>, vector<8x128xf32>
    %c127_i32_122 = arith.constant 127 : i32
    %222 = tpu.dynamic_rotate %195 by %c127_i32_122 dim 1 : vector<8x128xf32>, i32 -> vector<8x128xf32>
    %c1_i32_123 = arith.constant 1 : i32
    %223 = vector.broadcast %c1_i32_123 : i32 to vector<8x128xi32>
    %224 = arith.addi %197, %223 : vector<8x128xi32>
    %c0_i32_124 = arith.constant 0 : i32
    %225 = vector.broadcast %c0_i32_124 : i32 to vector<8x128xi32>
    %226 = arith.cmpi sge, %224, %225 : vector<8x128xi32>
    %c1_i32_125 = arith.constant 1 : i32
    %227 = vector.broadcast %c1_i32_125 : i32 to vector<8x128xi32>
    %228 = arith.addi %197, %227 : vector<8x128xi32>
    %c128_i32_126 = arith.constant 128 : i32
    %229 = vector.broadcast %c128_i32_126 : i32 to vector<8x128xi32>
    %230 = arith.cmpi slt, %228, %229 : vector<8x128xi32>
    %231 = arith.andi %226, %230 : vector<8x128xi1>
    %cst_127 = arith.constant 0.000000e+00 : f32
    %232 = vector.broadcast %cst_127 : f32 to vector<8x128xf32>
    %233 = arith.select %231, %222, %232 : vector<8x128xi1>, vector<8x128xf32>
    %c126_i32_128 = arith.constant 126 : i32
    %234 = tpu.dynamic_rotate %195 by %c126_i32_128 dim 1 : vector<8x128xf32>, i32 -> vector<8x128xf32>
    %c2_i32_129 = arith.constant 2 : i32
    %235 = vector.broadcast %c2_i32_129 : i32 to vector<8x128xi32>
    %236 = arith.addi %197, %235 : vector<8x128xi32>
    %c0_i32_130 = arith.constant 0 : i32
    %237 = vector.broadcast %c0_i32_130 : i32 to vector<8x128xi32>
    %238 = arith.cmpi sge, %236, %237 : vector<8x128xi32>
    %c2_i32_131 = arith.constant 2 : i32
    %239 = vector.broadcast %c2_i32_131 : i32 to vector<8x128xi32>
    %240 = arith.addi %197, %239 : vector<8x128xi32>
    %c128_i32_132 = arith.constant 128 : i32
    %241 = vector.broadcast %c128_i32_132 : i32 to vector<8x128xi32>
    %242 = arith.cmpi slt, %240, %241 : vector<8x128xi32>
    %243 = arith.andi %238, %242 : vector<8x128xi1>
    %cst_133 = arith.constant 0.000000e+00 : f32
    %244 = vector.broadcast %cst_133 : f32 to vector<8x128xf32>
    %245 = arith.select %243, %234, %244 : vector<8x128xi1>, vector<8x128xf32>
    %246 = tpu.concatenate %209, %221, %195, %233, %245 in 0 : vector<8x128xf32>, vector<8x128xf32>, vector<8x128xf32>, vector<8x128xf32>, vector<8x128xf32> -> vector<40x128xf32>
    %c0_134 = arith.constant 0 : index
    %c0_135 = arith.constant 0 : index
    %247 = vector.load %arg9[%c0_134, %c0_135] : memref<16x40xf32, #tpu.memory_space<vmem>>, vector<16x40xf32>
    %cst_136 = arith.constant dense<0.000000e+00> : vector<16x128xf32>
    %248 = tpu.matmul %247, %246, %cst_136 {dimension_numbers = #tpu.dot_dimension_numbers<[1], [0], [0], [1], [0, 0, 1, 1], [], []>} : vector<16x40xf32>, vector<40x128xf32>, vector<16x128xf32> -> vector<16x128xf32>
    %249 = tpu.iota {dimensions = array<i32: 1>} : vector<24x128xi32>
    %c1_i32_137 = arith.constant 1 : i32
    %250 = tpu.dynamic_rotate %193 by %c1_i32_137 dim 1 : vector<24x128xf32>, i32 -> vector<24x128xf32>
    %c-1_i32_138 = arith.constant -1 : i32
    %251 = vector.broadcast %c-1_i32_138 : i32 to vector<24x128xi32>
    %252 = arith.addi %249, %251 : vector<24x128xi32>
    %c0_i32_139 = arith.constant 0 : i32
    %253 = vector.broadcast %c0_i32_139 : i32 to vector<24x128xi32>
    %254 = arith.cmpi sge, %252, %253 : vector<24x128xi32>
    %c-1_i32_140 = arith.constant -1 : i32
    %255 = vector.broadcast %c-1_i32_140 : i32 to vector<24x128xi32>
    %256 = arith.addi %249, %255 : vector<24x128xi32>
    %c128_i32_141 = arith.constant 128 : i32
    %257 = vector.broadcast %c128_i32_141 : i32 to vector<24x128xi32>
    %258 = arith.cmpi slt, %256, %257 : vector<24x128xi32>
    %259 = arith.andi %254, %258 : vector<24x128xi1>
    %cst_142 = arith.constant 0xFF800000 : f32
    %260 = vector.broadcast %cst_142 : f32 to vector<24x128xf32>
    %261 = arith.select %259, %250, %260 : vector<24x128xi1>, vector<24x128xf32>
    %c127_i32_143 = arith.constant 127 : i32
    %262 = tpu.dynamic_rotate %193 by %c127_i32_143 dim 1 : vector<24x128xf32>, i32 -> vector<24x128xf32>
    %c1_i32_144 = arith.constant 1 : i32
    %263 = vector.broadcast %c1_i32_144 : i32 to vector<24x128xi32>
    %264 = arith.addi %249, %263 : vector<24x128xi32>
    %c0_i32_145 = arith.constant 0 : i32
    %265 = vector.broadcast %c0_i32_145 : i32 to vector<24x128xi32>
    %266 = arith.cmpi sge, %264, %265 : vector<24x128xi32>
    %c1_i32_146 = arith.constant 1 : i32
    %267 = vector.broadcast %c1_i32_146 : i32 to vector<24x128xi32>
    %268 = arith.addi %249, %267 : vector<24x128xi32>
    %c128_i32_147 = arith.constant 128 : i32
    %269 = vector.broadcast %c128_i32_147 : i32 to vector<24x128xi32>
    %270 = arith.cmpi slt, %268, %269 : vector<24x128xi32>
    %271 = arith.andi %266, %270 : vector<24x128xi1>
    %cst_148 = arith.constant 0xFF800000 : f32
    %272 = vector.broadcast %cst_148 : f32 to vector<24x128xf32>
    %273 = arith.select %271, %262, %272 : vector<24x128xi1>, vector<24x128xf32>
    %274 = arith.maximumf %193, %261 : vector<24x128xf32>
    %275 = arith.maximumf %274, %273 : vector<24x128xf32>
    %cst_149 = arith.constant dense<0.000000e+00> : vector<8x128xf32>
    %276 = tpu.matmul %196, %275, %cst_149 {dimension_numbers = #tpu.dot_dimension_numbers<[1], [0], [0], [1], [0, 0, 1, 1], [], []>} : vector<8x24xf32>, vector<24x128xf32>, vector<8x128xf32> -> vector<8x128xf32>
    %c0_150 = arith.constant 0 : index
    %c0_151 = arith.constant 0 : index
    %277 = vector.load %arg10[%c0_150, %c0_151] : memref<24x1xf32, #tpu.memory_space<vmem>>, vector<16x1xf32>
    %278 = vector.broadcast %277 : vector<16x1xf32> to vector<16x128xf32>
    %279 = arith.addf %248, %278 : vector<16x128xf32>
    %cst_152 = arith.constant 0.000000e+00 : f32
    %280 = vector.broadcast %cst_152 : f32 to vector<16x128xf32>
    %281 = arith.maximumf %279, %280 : vector<16x128xf32>
    %c16_153 = arith.constant 16 : index
    %c0_154 = arith.constant 0 : index
    %282 = vector.load %arg10[%c16_153, %c0_154] : memref<24x1xf32, #tpu.memory_space<vmem>>, vector<8x1xf32>
    %283 = vector.broadcast %282 : vector<8x1xf32> to vector<8x128xf32>
    %284 = arith.addf %276, %283 : vector<8x128xf32>
    %cst_155 = arith.constant 0.000000e+00 : f32
    %285 = vector.broadcast %cst_155 : f32 to vector<8x128xf32>
    %286 = arith.maximumf %284, %285 : vector<8x128xf32>
    %c0_156 = arith.constant 0 : index
    %c0_157 = arith.constant 0 : index
    %c0_158 = arith.constant 0 : index
    %287 = vector.load %arg1[%c0_156, %c0_157, %c0_158] : memref<1x4x128xf32, #tpu.memory_space<vmem>>, vector<1x4x128xf32>
    %288 = vector.shape_cast %287 : vector<1x4x128xf32> to vector<4x128xf32>
    %c0_159 = arith.constant 0 : index
    %c0_160 = arith.constant 0 : index
    %289 = vector.load %arg11[%c0_159, %c0_160] : memref<24x4xf32, #tpu.memory_space<vmem>>, vector<24x4xf32>
    %cst_161 = arith.constant dense<0.000000e+00> : vector<24x128xf32>
    %290 = tpu.matmul %289, %288, %cst_161 {dimension_numbers = #tpu.dot_dimension_numbers<[1], [0], [0], [1], [0, 0, 1, 1], [], []>} : vector<24x4xf32>, vector<4x128xf32>, vector<24x128xf32> -> vector<24x128xf32>
    %c0_162 = arith.constant 0 : index
    %c0_163 = arith.constant 0 : index
    %291 = vector.load %arg12[%c0_162, %c0_163] : memref<24x1xf32, #tpu.memory_space<vmem>>, vector<24x1xf32>
    %292 = vector.broadcast %291 : vector<24x1xf32> to vector<24x128xf32>
    %293 = arith.addf %290, %292 : vector<24x128xf32>
    %294 = vector.extract_strided_slice %293 {offsets = [0, 0], sizes = [16, 128], strides = [1, 1]} : vector<24x128xf32> to vector<16x128xf32>
    %295 = arith.addf %281, %294 : vector<16x128xf32>
    %cst_164 = arith.constant 0.000000e+00 : f32
    %296 = vector.broadcast %cst_164 : f32 to vector<16x128xf32>
    %297 = arith.maximumf %295, %296 : vector<16x128xf32>
    %298 = vector.extract_strided_slice %293 {offsets = [16, 0], sizes = [8, 128], strides = [1, 1]} : vector<24x128xf32> to vector<8x128xf32>
    %299 = arith.addf %286, %298 : vector<8x128xf32>
    %cst_165 = arith.constant 0.000000e+00 : f32
    %300 = vector.broadcast %cst_165 : f32 to vector<8x128xf32>
    %301 = arith.maximumf %299, %300 : vector<8x128xf32>
    %c0_166 = arith.constant 0 : index
    %c0_167 = arith.constant 0 : index
    %c0_168 = arith.constant 0 : index
    %302 = vector.load %arg13[%c0_166, %c0_167, %c0_168] : memref<1x24x128xf32, #tpu.memory_space<vmem>>, vector<1x16x128xf32>
    %303 = vector.shape_cast %302 : vector<1x16x128xf32> to vector<16x128xf32>
    %304 = vector.shape_cast %297 : vector<16x128xf32> to vector<1x16x128xf32>
    tpu.vector_store %arg13[%c0_166, %c0_167, %c0_168], %304 {strides = array<i32>} : memref<1x24x128xf32, #tpu.memory_space<vmem>>, vector<1x16x128xf32>,
    %c0_169 = arith.constant 0 : index
    %c16_170 = arith.constant 16 : index
    %c0_171 = arith.constant 0 : index
    %305 = vector.load %arg13[%c0_169, %c16_170, %c0_171] : memref<1x24x128xf32, #tpu.memory_space<vmem>>, vector<1x8x128xf32>
    %306 = vector.shape_cast %305 : vector<1x8x128xf32> to vector<8x128xf32>
    %307 = vector.shape_cast %301 : vector<8x128xf32> to vector<1x8x128xf32>
    tpu.vector_store %arg13[%c0_169, %c16_170, %c0_171], %307 {strides = array<i32>} : memref<1x24x128xf32, #tpu.memory_space<vmem>>, vector<1x8x128xf32>,
    return
  }
  func.func @transform_0(%arg0: i32) -> (i32, i32, i32) {
    %c0_i32 = arith.constant 0 : i32
    %c0_i32_0 = arith.constant 0 : i32
    %c0_i32_1 = arith.constant 0 : i32
    return %arg0, %c0_i32, %c0_i32_0 : i32, i32, i32
  }
  func.func @transform_1(%arg0: i32) -> (i32, i32) {
    %c0_i32 = arith.constant 0 : i32
    %c0_i32_0 = arith.constant 0 : i32
    %c0_i32_1 = arith.constant 0 : i32
    return %c0_i32, %c0_i32_0 : i32, i32
  }
  func.func @transform_2(%arg0: i32) -> (i32, i32) {
    %c0_i32 = arith.constant 0 : i32
    %c0_i32_0 = arith.constant 0 : i32
    %c0_i32_1 = arith.constant 0 : i32
    return %c0_i32, %c0_i32_0 : i32, i32
  }
  func.func @transform_3(%arg0: i32) -> (i32, i32) {
    %c0_i32 = arith.constant 0 : i32
    %c0_i32_0 = arith.constant 0 : i32
    %c0_i32_1 = arith.constant 0 : i32
    return %c0_i32, %c0_i32_0 : i32, i32
  }
  func.func @transform_4(%arg0: i32) -> (i32, i32) {
    %c0_i32 = arith.constant 0 : i32
    %c0_i32_0 = arith.constant 0 : i32
    %c0_i32_1 = arith.constant 0 : i32
    return %c0_i32, %c0_i32_0 : i32, i32
  }
  func.func @transform_5(%arg0: i32) -> (i32, i32) {
    %c0_i32 = arith.constant 0 : i32
    %c0_i32_0 = arith.constant 0 : i32
    %c0_i32_1 = arith.constant 0 : i32
    return %c0_i32, %c0_i32_0 : i32, i32
  }
  func.func @transform_6(%arg0: i32) -> (i32, i32) {
    %c0_i32 = arith.constant 0 : i32
    %c0_i32_0 = arith.constant 0 : i32
    %c0_i32_1 = arith.constant 0 : i32
    return %c0_i32, %c0_i32_0 : i32, i32
  }
  func.func @transform_7(%arg0: i32) -> (i32, i32) {
    %c0_i32 = arith.constant 0 : i32
    %c0_i32_0 = arith.constant 0 : i32
    %c0_i32_1 = arith.constant 0 : i32
    return %c0_i32, %c0_i32_0 : i32, i32
  }
  func.func @transform_8(%arg0: i32) -> (i32, i32) {
    %c0_i32 = arith.constant 0 : i32
    %c0_i32_0 = arith.constant 0 : i32
    %c0_i32_1 = arith.constant 0 : i32
    return %c0_i32, %c0_i32_0 : i32, i32
  }
  func.func @transform_9(%arg0: i32) -> (i32, i32) {
    %c0_i32 = arith.constant 0 : i32
    %c0_i32_0 = arith.constant 0 : i32
    %c0_i32_1 = arith.constant 0 : i32
    return %c0_i32, %c0_i32_0 : i32, i32
  }
  func.func @transform_10(%arg0: i32) -> (i32, i32) {
    %c0_i32 = arith.constant 0 : i32
    %c0_i32_0 = arith.constant 0 : i32
    %c0_i32_1 = arith.constant 0 : i32
    return %c0_i32, %c0_i32_0 : i32, i32
  }
  func.func @transform_11(%arg0: i32) -> (i32, i32) {
    %c0_i32 = arith.constant 0 : i32
    %c0_i32_0 = arith.constant 0 : i32
    %c0_i32_1 = arith.constant 0 : i32
    return %c0_i32, %c0_i32_0 : i32, i32
  }
  func.func @transform_12(%arg0: i32) -> (i32, i32, i32) {
    %c0_i32 = arith.constant 0 : i32
    %c0_i32_0 = arith.constant 0 : i32
    %c0_i32_1 = arith.constant 0 : i32
    return %arg0, %c0_i32, %c0_i32_0 : i32, i32, i32
  }
}

</mosaic_0001>

<bundles_post_ra>
// kernel: tpu_custom_call.1
= control target key start
LH: loop header
LB: loop body
LE: loop exit
PB: predicated region body
PF: predicated region fallthrough
CT: control target
= control target key end

     0   :  { %s2217_s0 = inlined_call_operand.vmem [shape: f32[2,4,128], index: 0, kind: input, shape index: {}]   ;;  %s2218_s1 = inlined_call_operand.vmem [shape: f32[16,4], index: 1, kind: input, shape index: {}]   ;;  %s2219_s2 = inlined_call_operand.vmem [shape: f32[16,40], index: 2, kind: input, shape index: {}]   ;;  %s2220_s3 = inlined_call_operand.vmem [shape: f32[24,1], index: 3, kind: input, shape index: {}]   ;;  %s2221_s4 = inlined_call_operand.vmem [shape: f32[16,24], index: 4, kind: input, shape index: {}]   ;;  %s2222_s5 = inlined_call_operand.vmem [shape: f32[16,40], index: 5, kind: input, shape index: {}]   ;;  %s2223_s6 = inlined_call_operand.vmem [shape: f32[24,1], index: 6, kind: input, shape index: {}]   ;;  %s2224_s7 = inlined_call_operand.vmem [shape: f32[16,24], index: 7, kind: input, shape index: {}]   ;;  %s2225_s8 = inlined_call_operand.vmem [shape: f32[16,40], index: 8, kind: input, shape index: {}]   ;;  %s2226_s9 = inlined_call_operand.vmem [shape: f32[24,1], index: 9, kind: input, shape index: {}]   ;;  %s2227_s10 = inlined_call_operand.vmem [shape: f32[24,4], index: 10, kind: input, shape index: {}]   ;;  %s2228_s11 = inlined_call_operand.vmem [shape: f32[24,1], index: 11, kind: input, shape index: {}]   ;;  %s2229_s12 = inlined_call_operand.hbm [shape: f32[2,24,128], index: 12, kind: output, shape index: {}]  }
   0x1   :  { %2232 = sst [smem:[#allocation6_spill]] %s2217_s0 }
   0x2   :  { %2233 = sst [smem:[#allocation7_spill]] %s2218_s1 }
   0x3   :  { %17 = vsyncpa [#allocation4], 0 }
   0x4   :  { %19 = vsyncpa [#allocation4 + $0x1], 0  ;;  %s1865_s21 = smov 0   ;;  %s1867_s22 = smov 0  }
   0x5   :  { %s1869_s23 = smov 0   ;;  %s1871_s24 = smov 0  }
   0x6 LB: > { %s1886_s25 = sadd.s32 4294967295, %s1788_s24   ;;  %s1497_s26 = sadd.s32 4294967294, %s1788_s24   ;;  %s1788_s24 = sphi %s1871_s24, %s2242_s24   ;;  %s1784_s23 = sphi %s1869_s23, %s2241_s23   ;;  %s1780_s22 = sphi %s1867_s22, %s2240_s22   ;;  %s1776_s21 = sphi %s1865_s21, %s2239_s21  }
   0x7   : > { %s1890_s27 = sadd.s32 1, %s1788_s24   ;;  %s289_s28 = sadd.s32 1, %s1784_s23 }
   0x8   : > { %s286_s29 = ssub.s32 %s1788_s24, %s1890_s27  ;;  %p299_p0 = scmp.ne.s32.totalorder %s1784_s23, %s1780_s22 }
   0x9   : > { %p287_p1 = scmp.eq.s32.totalorder %s286_s29, 0  ;;  %p300_p2 = scmp.eq.s32.totalorder %s1886_s25, 1 }
   0xa   : > { %p305_p3 = scmp.ne.s32.totalorder %s1780_s22, %s1776_s21  ;;  %p306_p4 = scmp.eq.s32.totalorder %s1497_s26, 1 }
   0xb   : > { %s1901_s30 = scalar_select %p287_p1, %s1784_s23, %s289_s28  }
   0xc   : > { %p1903_p5 = por %p300_p2, %p299_p0  ;;  %p1907_p6 = por %p306_p4, %p305_p3 }
   0xd   : > { %p1500_p7 = scmp.ge.s32.totalorder %s1788_s24, 1  ;;  %p364_p8 = scmp.lt.s32.totalorder %s1788_s24, 3 }
   0xf   : > { %p365_p9 = pnand %p1500_p7, %p364_p8 }
  0x10   : > { %p405_p10 = scmp.lt.s32.totalorder (!%p365_p9), %s1886_s25, 1  ;;  %s2236_s0 = sld [smem:[#allocation6_spill]] (!%p365_p9) }
  0x11   : > { %368 = sbr.rel (%p365_p9) target bundleno = 1601 (0x641), region = 68  ;;  %s2237_s1 = sld [smem:[#allocation7_spill]] (!%p365_p9) }
  0x12   : > { %s1792_s28 = smov (!%p365_p9), 1   ;;  %s1793_s29 = smov (!%p365_p9), 127  }
  0x13   : > { %s2230_s20 = smov (!%p365_p9), 2   ;;  %s1796_s26 = smov (!%p365_p9), 126  }
  0x14   : > { %s402_s18 = sand.u32 (!%p365_p9), 1, %s1780_s22  }
  0x16   : > { %v1790_v0 = vmov 0.0   ;;  %vm1791_vm0 = vmmov 0   ;;  %s406_s15 = scalar_select %p405_p10, %s1886_s25, 1  ;;  %vm415_vm1 = vcmask 1043456   ;;  %vm411_vm2 = vcmask 31744   ;;  %v520_v15 = vld [vmem:[%s2219_s2] sm:$0xff] }
  0x17   : > { %1580 = vmatprep.subr.mxu0 %v1790_v0  ;;  %1582 = vmatprep.mubr.msk.f32.mxu0 %vm1791_vm0, %v1790_v0  ;;  %v410_v1 = vld [vmem:[%s2237_s1] sm:$0xff]  ;;  %v1794_v3 = vmov 0   ;;  %v490_v4 = vlaneseq  ;;  %v489_v14 = vld [vmem:[%s2237_s1 + $0x8] sm:$0xff]  ;;  %vm542_vm5 = vcmask 326656   ;;  %v626_v20 = vld [vmem:[%s2220_s3 + $0x10] sm:$0xff]  ;;  %vm716_vm8 = vcmask 195584  }
  0x18   : > { %s1501_s16 = sshll.u32 %s406_s15, 2  ;;  %1726 = vset.pattern.permute.xlu0 %v1794_v3  ;;  %1727 = vset.pattern.permute.xlu1 %v1794_v3  ;;  %v531_v18 = vld [vmem:[%s2220_s3 + $0x8] sm:$0xff]  ;;  %v530_v19 = vld [vmem:[%s2220_s3] sm:$0xff]  ;;  %v924_v57 = vld [vmem:[%s2223_s6 + $0x10] sm:$0xff]  ;;  %s2238_s15 = smov 2  }
  0x19   : > { %s1921_s19 = scalar_lea.vmem %s2236_s0, %s1501_s16  ;;  %v491_v5 = vand.u32 127, %v490_v4  ;;  %1595 = vmatprep.mubr.msk.f32.mxu1 %vm542_vm5, %v520_v15  ;;  %v521_v29 = vld [vmem:[%s2219_s2 + $0x8] sm:$0xff]  ;;  %v715_v47 = vld [vmem:[%s2221_s4] sm:$0xff]  ;;  %s1676_s1 = smul.u32 24, %s402_s18 }
  0x1a   : > { %v409_v2 = vld [vmem:[%s1921_s19] sm:$0xf]  ;;  %v830_v59 = vld [vmem:[%s2223_s6 + $0x8] sm:$0xff]  ;;  %s2177_s16 = scalar_lea.sflag [#allocation4], %s402_s18 }
  0x1b   : > { %1581 = vmatpush3.msk.msra.mxu0 %vm415_vm1, %v409_v2  ;;  %522 = vrot.lane.b32.xlu1 %v409_v2, %s1792_s28  ;;  %v1934_v6 = vadd.s32 4294967295, %v491_v5  ;;  %v1937_v7 = vadd.s32 1, %v491_v5  ;;  %v1969_v21 = vadd.s32 2, %v491_v5  ;;  %v1976_v24 = vadd.s32 4294967294, %v491_v5  ;;  %v803_v54 = vld [vmem:[%s2222_s5] sm:$0xff]  ;;  %s404_s0 = scalar_lea.vmem [#allocation3], %s1676_s1 }
  0x1c   : > { %1583 = vmatmul.mubr.msk.f32.vlgmr.msra.gmra.mxu0 %vm411_vm2, %v410_v1  ;;  %1598 = vmatprep.subr.mxu0 %v1790_v0  ;;  %v829_v58 = vld [vmem:[%s2223_s6] sm:$0xff] }
  0x1d   : > { %1600 = vmatprep.mubr.msk.f32.mxu0 %vm1791_vm0, %v1790_v0  ;;  %vm502_vm3 = vcmp.ge.s32.totalorder %v1934_v6, 0  ;;  %vm510_vm4 = vcmp.lt.s32.totalorder %v1937_v7, 128  ;;  %vm517_vm6 = vcmp.lt.s32.totalorder %v1969_v21, 128  ;;  %vm495_vm7 = vcmp.ge.s32.totalorder %v1976_v24, 0  ;;  %v1098_v21 = vld [vmem:[%s2225_s8 + $0x8] sm:$0xff] }
  0x1f   : > { %525 = vrot.lane.b32.xlu1 %v409_v2, %s1793_s29 }
  0x8d   : > { %v523_v8 = vpop.permute.xlu1 %522 }
  0x8e   : > { %v524_v9 = vsel %vm502_vm3, %v523_v8, -inf  ;;  %v790_v8 = vld [vmem:[%s2221_s4 + $0x8] sm:$0xff] }
  0x8f   : > { %v528_v10 = vmax.f32 %v409_v2, %v524_v9 }
  0x91   : > { %v526_v11 = vpop.permute.xlu1 %525 }
  0x92   : > { %v527_v12 = vsel %vm510_vm4, %v526_v11, -inf }
  0x93   : > { %v529_v13 = vmax.f32 %v528_v10, %v527_v12  ;;  %v804_v10 = vld [vmem:[%s2222_s5 + $0x8] sm:$0xff] }
  0x95   : > { %1599 = vmatpush3.msk.msra.mxu0 %vm415_vm1, %v529_v13 }
  0x96   : > { %1601 = vmatmul.mubr.msk.f32.vlgmr.msra.gmra.mxu0 %vm411_vm2, %v489_v14  ;;  %1625 = vmatprep.subr.mxu0 %v1790_v0 }
  0x97   : > { %1631 = vmatprep.mubr.msk.f32.mxu0 %vm1791_vm0, %v1790_v0 }
  0xdc   : > { %v485_v16 = vpop.f32.mrf.mxu0 }
  0xdd   : > { %492 = vrot.lane.b32.xlu1 %v485_v16, %s2230_s20  ;;  %513 = vrot.lane.b32.xlu0 %v485_v16, %s1796_s26 }
  0xde   : > { %v1584_v17 = vpop.f32.mrf.mxu0 }
  0xe1   : > { %506 = vrot.lane.b32.xlu0 %v485_v16, %s1793_s29  ;;  %539 = vperm.xlu1 %1727, %v531_v18  }
  0xe5   : > { %499 = vrot.lane.b32.xlu0 %v485_v16, %s1792_s28  ;;  %534 = vperm.xlu1 %1727, %v530_v19  }
  0xe9   : > { %629 = vperm.xlu0 %1726, %v626_v20  }
 0x14f   : > { %v514_v22 = vpop.permute.xlu0 %513  ;;  %v493_v28 = vpop.permute.xlu1 %492 }
 0x150   : > { %1585 = vmatprep.subr.msk.mxu1 %vm517_vm6, %v514_v22 }
 0x151   : > { %1586 = vmatpush3.msk.msra.mxu1 %vm517_vm6, %v514_v22 }
 0x153   : > { %v507_v23 = vpop.permute.xlu0 %506 }
 0x154   : > { %1587 = vmatprep.subr.msk.mxu1 %vm510_vm4, %v507_v23 }
 0x155   : > { %1588 = vmatpush3.msk.msra.mxu1 %vm510_vm4, %v507_v23 }
 0x156   : > { %1589 = vmatprep.subr.mxu1 %v485_v16  ;;  %v704_v25 = vpop.f32.mrf.mxu0 }
 0x157   : > { %1590 = vmatpush3.msra.mxu1 %v485_v16  ;;  %v500_v26 = vpop.permute.xlu0 %499 }
 0x158   : > { %1591 = vmatprep.subr.msk.mxu1 %vm502_vm3, %v500_v26  ;;  %v1602_v27 = vpop.f32.mrf.mxu0 }
 0x159   : > { %1592 = vmatpush3.msk.msra.mxu1 %vm502_vm3, %v500_v26  ;;  %v1010_v26 = vld [vmem:[%s2224_s7] sm:$0xff] }
 0x15a   : > { %1593 = vmatprep.subr.msk.mxu1 %vm495_vm7, %v493_v28 }
 0x15b   : > { %1594 = vmatpush3.msk.msra.mxu1 %vm495_vm7, %v493_v28 }
 0x15c   : > { %1596 = vmatmul.mubr.msk.f32.vlgmr.msra.gmra.mxu1 %vm542_vm5, %v521_v29  ;;  %1603 = vmatprep.subr.mxu1 %v1790_v0  ;;  %v540_v33 = vpop.permute.xlu1 %539 }
 0x15d   : > { %1609 = vmatprep.mubr.msk.f32.mxu1 %vm1791_vm0, %v1790_v0 }
 0x160   : > { %v535_v34 = vpop.permute.xlu1 %534 }
 0x164   : > { %v630_v30 = vpop.permute.xlu0 %629 }
 0x165   : > { %v705_v31 = vadd.f32 %v704_v25, %v630_v30 }
 0x167   : > { %v708_v32 = vmax.f32 %v705_v31, 0.0 }
 0x169   : > { %809 = vrot.lane.b32.xlu0 %v708_v32, %s1792_s28  ;;  %818 = vrot.lane.b32.xlu1 %v708_v32, %s1793_s29 }
 0x16a   : > { %1604 = vmatpush3.msra.mxu1 %v708_v32 }
 0x16b   : > { %1605 = vmatprep.subr.mxu1 %v1790_v0 }
 0x1db   : > { %v810_v35 = vpop.permute.xlu0 %809  ;;  %v819_v36 = vpop.permute.xlu1 %818 }
 0x1dc   : > { %v813_v37 = vsel %vm502_vm3, %v810_v35, -inf  ;;  %v822_v38 = vsel %vm510_vm4, %v819_v36, -inf }
 0x1dd   : > { %v825_v39 = vmax.f32 %v708_v32, %v813_v37 }
 0x1df   : > { %v828_v40 = vmax.f32 %v825_v39, %v822_v38 }
 0x1e1   : > { %1626 = vmatpush3.msra.mxu0 %v828_v40 }
 0x1e2   : > { %1627 = vmatprep.subr.mxu0 %v1790_v0 }
 0x21c   : > { %v1597_v41 = vpop.f32.mrf.mxu1 }
 0x21d   : > { %v621_v42 = vadd.f32 %v1597_v41, %v540_v33 }
 0x21e   : > { %v615_v43 = vpop.f32.mrf.mxu1 }
 0x21f   : > { %v625_v44 = vmax.f32 %v621_v42, 0.0  ;;  %v616_v45 = vadd.f32 %v615_v43, %v535_v34 }
 0x221   : > { %v624_v46 = vmax.f32 %v616_v45, 0.0  ;;  %807 = vrot.lane.b32.xlu0 %v625_v44, %s1792_s28  ;;  %1606 = vmatpush3.msra.mxu1 %v625_v44  ;;  %v1084_v45 = vld [vmem:[%s2224_s7 + $0x8] sm:$0xff] }
 0x222   : > { %1607 = vmatprep.subr.mxu1 %v1790_v0 }
 0x223   : > { %805 = vrot.lane.b32.xlu1 %v624_v46, %s1792_s28  ;;  %1608 = vmatpush3.msra.mxu1 %v624_v46 }
 0x224   : > { %1610 = vmatmul.mubr.msk.f32.vlgmr.msra.gmra.mxu1 %vm716_vm8, %v715_v47  ;;  %v1299_v47 = vld [vmem:[%s2227_s10] sm:$0xff] }
 0x225   : > { %816 = vrot.lane.b32.xlu0 %v625_v44, %s1793_s29  ;;  %1622 = vmatprep.mubr.msk.f32.mxu1 %vm542_vm5, %v803_v54  ;;  %v1302_v54 = vld [vmem:[%s2228_s11] sm:$0xff] }
 0x293   : > { %v808_v48 = vpop.permute.xlu0 %807 }
 0x294   : > { %v812_v49 = vsel %vm502_vm3, %v808_v48, -inf  ;;  %v1300_v48 = vld [vmem:[%s2227_s10 + $0x8] sm:$0xff] }
 0x295   : > { %v824_v50 = vmax.f32 %v625_v44, %v812_v49  ;;  %v806_v60 = vpop.permute.xlu1 %805  ;;  %v1301_v49 = vld [vmem:[%s2227_s10 + $0x10] sm:$0xff] }
 0x296   : > { %v811_v63 = vsel %vm502_vm3, %v806_v60, -inf }
 0x297   : > { %v817_v51 = vpop.permute.xlu0 %816  ;;  %v823_v1 = vmax.f32 %v624_v46, %v811_v63 }
 0x298   : > { %v821_v52 = vsel %vm510_vm4, %v817_v51, -inf }
 0x299   : > { %v827_v53 = vmax.f32 %v824_v50, %v821_v52  ;;  %v1097_v50 = vld [vmem:[%s2225_s8] sm:$0xff] }
 0x29b   : > { %1628 = vmatpush3.msra.mxu0 %v827_v53  ;;  %v1123_v53 = vld [vmem:[%s2226_s9] sm:$0xff] }
 0x29c   : > { %1629 = vmatprep.subr.mxu0 %v1790_v0 }
 0x2e4   : > { %v786_v55 = vpop.f32.mrf.mxu1 }
 0x2e5   : > { %797 = vrot.lane.b32.xlu0 %v786_v55, %s1793_s29  ;;  %800 = vrot.lane.b32.xlu1 %v786_v55, %s1796_s26 }
 0x2e6   : > { %v1611_v56 = vpop.f32.mrf.mxu1 }
 0x2e7   : > { %v1304_v56 = vld [vmem:[%s2228_s11 + $0x10] sm:$0xff] }
 0x2e9   : > { %794 = vrot.lane.b32.xlu0 %v786_v55, %s1792_s28  ;;  %814 = vrot.lane.b32.xlu1 %v624_v46, %s1793_s29  ;;  %v1298_v46 = vld [vmem:[%s1921_s19] sm:$0xf]  ;;  %s1797_s19 = smov [#allocation3]  }
 0x2ea   : > { %s1732_s17 = sshll.u32 %s1797_s19, 4  ;;  %s1733_s17 = int_to_ptr.vmem [resolvable:$false] %s1732_s17 }
 0x2eb   : > { %s1734_s1 = scalar_lea.vmem %s1733_s17, 768 }
 0x2ed   : > { %927 = vperm.xlu0 %1726, %v924_v57   ;;  %791 = vrot.lane.b32.xlu1 %v786_v55, %s2238_s15  ;;  %v1303_v57 = vld [vmem:[%s2228_s11 + $0x8] sm:$0xff] }
 0x2f1   : > { %833 = vperm.xlu0 %1726, %v829_v58   ;;  %838 = vperm.xlu1 %1727, %v830_v59  }
 0x357   : > { %v798_v61 = vpop.permute.xlu0 %797  ;;  %v801_v62 = vpop.permute.xlu1 %800 }
 0x358   : > { %1612 = vmatprep.subr.msk.mxu1 %vm517_vm6, %v801_v62 }
 0x359   : > { %1613 = vmatpush3.msk.msra.mxu1 %vm517_vm6, %v801_v62 }
 0x35a   : > { %1614 = vmatprep.subr.msk.mxu1 %vm510_vm4, %v798_v61 }
 0x35b   : > { %1615 = vmatpush3.msk.msra.mxu1 %vm510_vm4, %v798_v61  ;;  %v815_v2 = vpop.permute.xlu1 %814  ;;  %v795_v4 = vpop.permute.xlu0 %794 }
 0x35c   : > { %v820_v3 = vsel %vm510_vm4, %v815_v2, -inf  ;;  %1616 = vmatprep.subr.mxu1 %v786_v55 }
 0x35d   : > { %v826_v5 = vmax.f32 %v823_v1, %v820_v3  ;;  %1617 = vmatpush3.msra.mxu1 %v786_v55  ;;  %v1218_v55 = vld [vmem:[%s2226_s9 + $0x10] sm:$0xff] }
 0x35e   : > { %1618 = vmatprep.subr.msk.mxu1 %vm502_vm3, %v795_v4 }
 0x35f   : > { %1619 = vmatpush3.msk.msra.mxu1 %vm502_vm3, %v795_v4  ;;  %1630 = vmatpush3.msra.mxu0 %v826_v5  ;;  %v792_v9 = vpop.permute.xlu1 %791 }
 0x360   : > { %1620 = vmatprep.subr.msk.mxu1 %vm495_vm7, %v792_v9  ;;  %1632 = vmatmul.mubr.msk.f32.vlgmr.msra.gmra.mxu0 %vm716_vm8, %v790_v8 }
 0x361   : > { %1621 = vmatpush3.msk.msra.mxu1 %vm495_vm7, %v792_v9  ;;  %1634 = vmatprep.subr.mxu0 %v1790_v0 }
 0x362   : > { %1623 = vmatmul.mubr.msk.f32.vlgmr.msra.gmra.mxu1 %vm542_vm5, %v804_v10  ;;  %1640 = vmatprep.mubr.msk.f32.mxu0 %vm1791_vm0, %v1790_v0 }
 0x363   : > { %1653 = vmatprep.mubr.msk.f32.mxu1 %vm542_vm5, %v1097_v50 }
 0x368   : > { %v928_v11 = vpop.permute.xlu0 %927 }
 0x36c   : > { %v839_v13 = vpop.permute.xlu1 %838  ;;  %v834_v19 = vpop.permute.xlu0 %833 }
 0x420   : > { %v999_v12 = vpop.f32.mrf.mxu0 }
 0x421   : > { %v1000_v14 = vadd.f32 %v999_v12, %v928_v11 }
 0x422   : > { %v1624_v15 = vpop.f32.mrf.mxu1  ;;  %v1633_v16 = vpop.f32.mrf.mxu0 }
 0x423   : > { %v1003_v17 = vmax.f32 %v1000_v14, 0.0  ;;  %v919_v18 = vadd.f32 %v1624_v15, %v839_v13 }
 0x424   : > { %v913_v20 = vpop.f32.mrf.mxu1 }
 0x425   : > { %v923_v22 = vmax.f32 %v919_v18, 0.0  ;;  %v914_v23 = vadd.f32 %v913_v20, %v834_v19  ;;  %1103 = vrot.lane.b32.xlu1 %v1003_v17, %s1792_s28  ;;  %1635 = vmatpush3.msra.mxu0 %v1003_v17 }
 0x426   : > { %1636 = vmatprep.subr.mxu0 %v1790_v0 }
 0x427   : > { %v922_v25 = vmax.f32 %v914_v23, 0.0  ;;  %1101 = vrot.lane.b32.xlu0 %v923_v22, %s1792_s28  ;;  %1637 = vmatpush3.msra.mxu0 %v923_v22 }
 0x428   : > { %1638 = vmatprep.subr.mxu0 %v1790_v0 }
 0x429   : > { %1112 = vrot.lane.b32.xlu1 %v1003_v17, %s1793_s29  ;;  %1639 = vmatpush3.msra.mxu0 %v922_v25 }
 0x42a   : > { %1641 = vmatmul.mubr.msk.f32.vlgmr.msra.gmra.mxu0 %vm716_vm8, %v1010_v26  ;;  %1656 = vmatprep.subr.mxu0 %v1790_v0 }
 0x42b   : > { %1099 = vrot.lane.b32.xlu0 %v922_v25, %s1792_s28  ;;  %1662 = vmatprep.mubr.msk.f32.mxu0 %vm1791_vm0, %v1790_v0 }
 0x42d   : > { %1110 = vrot.lane.b32.xlu1 %v923_v22, %s1793_s29 }
 0x42f   : > { %1108 = vrot.lane.b32.xlu0 %v922_v25, %s1793_s29 }
 0x497   : > { %v1104_v27 = vpop.permute.xlu1 %1103 }
 0x498   : > { %v1107_v28 = vsel %vm502_vm3, %v1104_v27, -inf }
 0x499   : > { %v1102_v29 = vpop.permute.xlu0 %1101  ;;  %v1119_v30 = vmax.f32 %v1003_v17, %v1107_v28 }
 0x49a   : > { %v1106_v32 = vsel %vm502_vm3, %v1102_v29, -inf }
 0x49b   : > { %v1113_v31 = vpop.permute.xlu1 %1112  ;;  %v1118_v37 = vmax.f32 %v923_v22, %v1106_v32 }
 0x49c   : > { %v1116_v33 = vsel %vm510_vm4, %v1113_v31, -inf }
 0x49d   : > { %v1122_v34 = vmax.f32 %v1119_v30, %v1116_v33  ;;  %v1100_v35 = vpop.permute.xlu0 %1099 }
 0x49e   : > { %v1105_v36 = vsel %vm502_vm3, %v1100_v35, -inf }
 0x49f   : > { %v1111_v38 = vpop.permute.xlu1 %1110  ;;  %1657 = vmatpush3.msra.mxu0 %v1122_v34  ;;  %v1117_v40 = vmax.f32 %v922_v25, %v1105_v36 }
 0x4a0   : > { %v1115_v39 = vsel %vm510_vm4, %v1111_v38, -inf  ;;  %1658 = vmatprep.subr.mxu0 %v1790_v0 }
 0x4a1   : > { %v1121_v41 = vmax.f32 %v1118_v37, %v1115_v39  ;;  %v1109_v42 = vpop.permute.xlu0 %1108 }
 0x4a2   : > { %v1114_v43 = vsel %vm510_vm4, %v1109_v42, -inf }
 0x4a3   : > { %v1120_v44 = vmax.f32 %v1117_v40, %v1114_v43  ;;  %1659 = vmatpush3.msra.mxu0 %v1121_v41 }
 0x4a4   : > { %1660 = vmatprep.subr.mxu0 %v1790_v0 }
 0x4a5   : > { %1661 = vmatpush3.msra.mxu0 %v1120_v44 }
 0x4a6   : > { %1663 = vmatmul.mubr.msk.f32.vlgmr.msra.gmra.mxu0 %vm716_vm8, %v1084_v45  ;;  %1665 = vmatprep.subr.mxu0 %v1790_v0 }
 0x4a7   : > { %1666 = vmatpush3.msk.msra.mxu0 %vm415_vm1, %v1298_v46  ;;  %1667 = vmatprep.mubr.msk.f32.mxu0 %vm1791_vm0, %v1790_v0 }
 0x4aa   : > { %1668 = vmatmul.mubr.msk.f32.vlgmr.msra.gmra.mxu0 %vm411_vm2, %v1299_v47 }
 0x4ab   : > { %1670 = vmatprep.mubr.msk.f32.mxu0 %vm1791_vm0, %v1790_v0 }
 0x4ae   : > { %1671 = vmatmul.mubr.msk.f32.gmra.mxu0 %vm411_vm2, %v1300_v48 }
 0x4af   : > { %1673 = vmatprep.mubr.msk.f32.mxu0 %vm1791_vm0, %v1790_v0  ;;  %v1124_v0 = vld [vmem:[%s2226_s9 + $0x8] sm:$0xff] }
 0x4b2   : > { %1674 = vmatmul.mubr.msk.f32.gmra.mxu0 %vm411_vm2, %v1301_v49 }
 0x4ea   : > { %v1080_v51 = vpop.f32.mrf.mxu0 }
 0x4eb   : > { %1091 = vrot.lane.b32.xlu0 %v1080_v51, %s1793_s29  ;;  %1094 = vrot.lane.b32.xlu1 %v1080_v51, %s1796_s26  ;;  %s1677_s29 = smul.u32 384, %s1886_s25  ;;  %s1435_s26 = sshll.u32 %s404_s0, 4  ;;  %s2170_s26 = int_to_ptr.vmem [resolvable:$true] %s1435_s26 }
 0x4ec   : > { %v1642_v52 = vpop.f32.mrf.mxu0  ;;  %s1728_s25 = scalar_lea.vmem %s2170_s26, 384  ;;  %p1735_p0 = scmp.lt.s32.totalorder %s2170_s26, %s1733_s17 }
 0x4ed   : > { %s2175_s20 = scalar_lea.hbm %s2229_s12, %s1677_s29  ;;  %p1729_p11 = scmp.ne.s32.totalorder %s2170_s26, %s1728_s25 }
 0x4ee   : > { %p1736_p1 = scmp.lt.s32.totalorder %s1734_s1, %s1728_s25 }
 0x4ef   : > { %1085 = vrot.lane.b32.xlu0 %v1080_v51, %s2238_s15  ;;  %1088 = vrot.lane.b32.xlu1 %v1080_v51, %s1792_s28  ;;  %p1730_p12 = pnand %p1729_p11, %p1903_p5 }
 0x4f0   : > { %p1737_p2 = por %p1736_p1, %p1735_p0 }
 0x4f1   : > { %p1731_p13 = pneg %p1730_p12 }
 0x4f3   : > { %1132 = vperm.xlu0 %1726, %v1124_v0   ;;  %1127 = vperm.xlu1 %1727, %v1123_v53   ;;  %p1738_p3 = pnand %p1737_p2, %p1731_p13 }
 0x4f7   : > { %1307 = vperm.xlu0 %1726, %v1302_v54   ;;  %1221 = vperm.xlu1 %1727, %v1218_v55  }
 0x4fb   : > { %1317 = vperm.xlu0 %1726, %v1304_v56   ;;  %1312 = vperm.xlu1 %1727, %v1303_v57  }
 0x55d   : > { %v1095_v58 = vpop.permute.xlu1 %1094  ;;  %v1092_v59 = vpop.permute.xlu0 %1091 }
 0x55e   : > { %1643 = vmatprep.subr.msk.mxu1 %vm517_vm6, %v1095_v58 }
 0x55f   : > { %1644 = vmatpush3.msk.msra.mxu1 %vm517_vm6, %v1095_v58 }
 0x560   : > { %1645 = vmatprep.subr.msk.mxu1 %vm510_vm4, %v1092_v59 }
 0x561   : > { %1646 = vmatpush3.msk.msra.mxu1 %vm510_vm4, %v1092_v59  ;;  %v1089_v60 = vpop.permute.xlu1 %1088  ;;  %v1086_v61 = vpop.permute.xlu0 %1085 }
 0x562   : > { %1647 = vmatprep.subr.mxu1 %v1080_v51 }
 0x563   : > { %1648 = vmatpush3.msra.mxu1 %v1080_v51 }
 0x564   : > { %1649 = vmatprep.subr.msk.mxu1 %vm502_vm3, %v1089_v60 }
 0x565   : > { %1650 = vmatpush3.msk.msra.mxu1 %vm502_vm3, %v1089_v60 }
 0x566   : > { %1651 = vmatprep.subr.msk.mxu1 %vm495_vm7, %v1086_v61  ;;  %v1293_v7 = vpop.f32.mrf.mxu0 }
 0x567   : > { %1652 = vmatpush3.msk.msra.mxu1 %vm495_vm7, %v1086_v61 }
 0x568   : > { %1654 = vmatmul.mubr.msk.f32.vlgmr.msra.gmra.mxu1 %vm542_vm5, %v1098_v21  ;;  %v1664_v62 = vpop.f32.mrf.mxu0 }
 0x56a   : > { %v1398_v63 = vpop.f32.mrf.mxu0 }
 0x56c   : > { %v1669_v1 = vpop.f32.mrf.mxu0 }
 0x56e   : > { %v1133_v2 = vpop.permute.xlu0 %1132  ;;  %v1128_v6 = vpop.permute.xlu1 %1127 }
 0x56f   : > { %v1403_v3 = vpop.f32.mrf.mxu0 }
 0x571   : > { %v1672_v4 = vpop.f32.mrf.mxu0 }
 0x572   : > { %v1308_v5 = vpop.permute.xlu0 %1307  ;;  %v1222_v8 = vpop.permute.xlu1 %1221 }
 0x573   : > { %v1399_v9 = vadd.f32 %v1398_v63, %v1308_v5  ;;  %v1294_v10 = vadd.f32 %v1293_v7, %v1222_v8  ;;  %v1408_v11 = vpop.f32.mrf.mxu0 }
 0x575   : > { %v1675_v12 = vpop.f32.mrf.mxu0  ;;  %v1297_v24 = vmax.f32 %v1294_v10, 0.0 }
 0x576   : > { %v1318_v13 = vpop.permute.xlu0 %1317  ;;  %v1313_v17 = vpop.permute.xlu1 %1312 }
 0x577   : > { %v1409_v14 = vadd.f32 %v1408_v11, %v1318_v13  ;;  %v1404_v22 = vadd.f32 %v1403_v3, %v1313_v17 }
 0x579   : > { %v1416_v15 = vadd.f32 %v1409_v14, %v1297_v24 }
 0x57b   : > { %v1417_v16 = vmax.f32 %v1416_v15, 0.0 }
 0x57d   : > { %1420 = vst [vmem:[%s404_s0 + $0x10] sm:$0xff] %v1417_v16 }
 0x628   : > { %v1655_v18 = vpop.f32.mrf.mxu1 }
 0x629   : > { %v1213_v19 = vadd.f32 %v1655_v18, %v1133_v2 }
 0x62a   : > { %v1207_v20 = vpop.f32.mrf.mxu1 }
 0x62b   : > { %v1217_v23 = vmax.f32 %v1213_v19, 0.0  ;;  %v1208_v25 = vadd.f32 %v1207_v20, %v1128_v6 }
 0x62d   : > { %v1413_v26 = vadd.f32 %v1404_v22, %v1217_v23  ;;  %v1216_v27 = vmax.f32 %v1208_v25, 0.0 }
 0x62f   : > { %v1415_v28 = vmax.f32 %v1413_v26, 0.0  ;;  %v1412_v29 = vadd.f32 %v1399_v9, %v1216_v27 }
 0x631   : > { %1419 = vst [vmem:[%s404_s0 + $0x8] sm:$0xff] %v1415_v28  ;;  %v1414_v30 = vmax.f32 %v1412_v29, 0.0 }
 0x633   : > { %1418 = vst [vmem:[%s404_s0] sm:$0xff] %v1414_v30 }
 0x634   : > { %1741 = shalt.err (!%p1738_p3)
}
 0x635   : > { %s1742_s18 = scalar_lea.hbm %s2175_s20, 384  ;;  %s1746_s28 = scalar_lea.hbm %s2229_s12, 768 }
 0x636   : > { %p1743_p4 = scmp.ne.s32.totalorder %s2175_s20, %s1742_s18  ;;  %p1747_p9 = scmp.lt.s32.totalorder %s2175_s20, %s2229_s12 }
 0x637   : > { %p1748_p10 = scmp.lt.s32.totalorder %s1746_s28, %s1742_s18 }
 0x638   : > { %p1744_p7 = pnand %p1743_p4, %p1903_p5 }
 0x639   : > { %p1749_p11 = por %p1748_p10, %p1747_p9 }
 0x63a   : > { %p1745_p8 = pneg %p1744_p7 }
 0x63c   : > { %p1750_p12 = pnand %p1749_p11, %p1745_p8 }
 0x63e   : > { %1753 = shalt.err (!%p1750_p12)
}
 0x63f   : > { %s1798_s25 = smov 128   ;;  %s1799_s17 = smov 8  }
 0x640   : > { %1678 = dma.vmem_to_hbm [thread:$0]  (%p1903_p5), %s2170_s26, 384, %s2175_s20, %s2177_s16, %s1798_s25, %s1798_s25, %s1799_s17  }
 0x641 PF: > { %p1684_p13 = scmp.ge.s32.totalorder %s1788_s24, 2  ;;  %s1450_s1 = sand.u32 1, %s1776_s21  }
 0x642   : > { %s1451_s18 = scalar_lea.sflag [#allocation4], %s1450_s1 }
 0x643   : > { %p1681_p0 = pnand %p1684_p13, %p1907_p6 }
 0x645   : > { %p1682_p1 = pneg %p1681_p0 }
 0x647   : > { %1771 = dma.done.wait (%p1682_p1), %s1451_s18, 384  }
 0x648   : > { %1773 = vsyncadd (%p1682_p1), %s1451_s18, 4294966912  ;;  %p22_p2 = scmp.ge.s32.totalorder %s1890_s27, 4   ;;  %s2239_s21 = smov %s1780_s22 }
 0x649   : > { %s2240_s22 = smov %s1784_s23  ;;  %s2241_s23 = smov %s1901_s30 }
 0x64a   : > { %s2242_s24 = smov %s1890_s27  ;;  %24 = sbr.rel (!%p22_p2) target bundleno = 6 (0x6), region = 103 }
 0x64f   :  { %1456 = vsyncpa [#allocation4], 1 }
 0x650   :  { %1458 = vsyncpa [#allocation4 + $0x1], 1 }

</bundles_post_ra>
